<compile_context>
chip_gen: v7x
topology: tpu7x:2x2x1
jax: 0.10.0
libtpu: 0.0.40
codegen_flags: <defaults>
</compile_context>

<pallas_src>
import jax
import jax.numpy as jnp
from jax import lax
from jax.experimental import pallas as pl
from jax.experimental.pallas import tpu as pltpu

EMBED = 300          # self.embed_size
HIDDEN = 25          # self.hidden_size
HP = 32              # HIDDEN padded to a clean sublane/lane multiple
GP = 4 * HP          # fused gate width (i|f|g|o) padded -> 128 lanes
INNER = 5            # self.inner_dim
NOUT = 2             # classifier output
VOCAB = 50           # synthetic embedding table size

# ---- packed-slab row layout (f32, 128 lanes, one DMA) -----------------------
WHH_ROW = 0          # rows [0,32)  : fused recurrent weights (32, 128)
BG_ROW = 32          # row 32       : fused gate bias (1, 128)
H0_ROW = 34          # rows [34,36) : initial hidden (lanes 0:25 real)
C0_ROW = 36          # rows [36,38) : initial cell   (lanes 0:25 real)
WC_ROW = 40          # rows [40,48) : 4 classifier blocks, each (2, 32)
BC_ROW = 48          # rows [48,50) : folded classifier bias, lane 0
SLAB_ROWS = 56


def _sigmoid(x):
    # explicit formula: exp + add + divide all lower cleanly in Mosaic
    return 1.0 / (1.0 + jnp.exp(-x))


def _make_kernel(L1, L2):
    """Builds the Pallas kernel for static sequence lengths L1, L2."""
    Lmin, Lmax = min(L1, L2), max(L1, L2)

    def kernel(embs_ref, wih_ref, slab_ref, out_ref, xp_ref):
        # embs_ref : (rows_pad, EMBED) row 2*t+k = token t of sequence k
        # wih_ref  : (EMBED, GP)       fused, gate-padded input weights
        # slab_ref : (SLAB_ROWS, GP)   packed small constants (see layout)
        # out_ref  : (2, 1)            logits
        # xp_ref   : VMEM scratch (rows_pad, GP) hoisted input projection

        # ---- hoisted input projection with the gate bias folded in ----------
        bg = slab_ref[BG_ROW:BG_ROW + 1, :]                       # (1, GP)
        xp_ref[...] = jnp.dot(embs_ref[...], wih_ref[...],
                              preferred_element_type=jnp.float32) + bg

        whh = slab_ref[WHH_ROW:WHH_ROW + HP, :]                   # (HP, GP)

        # static lane mask: tanh on the g gate (lanes [64,96)), sigmoid else
        lane = lax.broadcasted_iota(jnp.int32, (1, GP), 1)
        is_g = jnp.logical_and(lane >= 2 * HP, lane < 3 * HP)

        def cell(x_pre, h, c):
            # x_pre already contains x @ W_ih + (b_ih + b_hh)
            gates = x_pre + jnp.dot(h, whh, preferred_element_type=jnp.float32)
            act = jnp.where(is_g, jnp.tanh(gates), _sigmoid(gates))
            i = act[:, 0:HP]
            f = act[:, HP:2 * HP]
            g = act[:, 2 * HP:3 * HP]
            o = act[:, 3 * HP:4 * HP]
            c_new = f * c + i * g
            h_new = o * jnp.tanh(c_new)
            return h_new, c_new

        h = slab_ref[H0_ROW:H0_ROW + 2, 0:HP]                     # (2, HP)
        c = slab_ref[C0_ROW:C0_ROW + 2, 0:HP]

        # shared steps: both sequences advance with one (2,HP)x(HP,GP) dot
        for t in range(Lmin):
            h, c = cell(xp_ref[2 * t:2 * t + 2, :], h, c)

        # tail: only the longer sequence advances (static row choice)
        k = 0 if L1 >= L2 else 1
        hk, ck = h[k:k + 1, :], c[k:k + 1, :]
        for t in range(Lmin, Lmax):
            r = 2 * t + k
            hk, ck = cell(xp_ref[r:r + 1, :], hk, ck)
        if k == 0:
            v1, v2 = hk, h[1:2, :]
        else:
            v1, v2 = h[0:1, :], hk

        # ---- classifier epilogue --------------------------------------------
        # Linear(125,5) ∘ Linear(5,2) folded into Linear(125,2); the (v1+v2)/2
        # block is regrouped into the v1 / v2 blocks -> only 4 feature blocks.
        #   out[j] = bc[j] + sum_k sum_lanes(feat_k * blk_k[j, :])
        # Pure VPU multiplies + lane reductions; padded lanes carry zero weights.
        feats = (v1, jnp.abs(v1 - v2), v2, v1 * v2)
        acc = slab_ref[BC_ROW:BC_ROW + 2, 0:1]                    # (2, 1)
        for n, fk in enumerate(feats):
            blk = slab_ref[WC_ROW + 2 * n:WC_ROW + 2 * n + 2, 0:HP]   # (2, HP)
            acc = acc + jnp.sum(blk * fk, axis=1, keepdims=True)
        out_ref[...] = acc                                        # (2, 1)

    return kernel


def siamese_lstm_v2_forward(emb1, emb2, params, h0, c0):
    """emb1: (L1, EMBED), emb2: (L2, EMBED), h0/c0: (2, HIDDEN) -> (1, 1, 2)."""
    L1, L2 = int(emb1.shape[0]), int(emb2.shape[0])
    Lmax = max(L1, L2)
    rows = 2 * Lmax
    rows_pad = ((rows + 7) // 8) * 8

    # interleave the two (zero-padded) sequences: row 2*t+k = token t of seq k
    embs = jnp.zeros((Lmax, 2, EMBED), jnp.float32)
    embs = embs.at[:L1, 0].set(emb1).at[:L2, 1].set(emb2)
    embs = embs.reshape(rows, EMBED)
    embs = jnp.zeros((rows_pad, EMBED), jnp.float32).at[:rows].set(embs)

    # pack the small per-call constants into one lane-padded slab (one DMA)
    slab = jnp.zeros((SLAB_ROWS, GP), jnp.float32)
    slab = slab.at[WHH_ROW:WHH_ROW + HP, :].set(params["whh_fused"])
    slab = slab.at[BG_ROW, :].set(params["b_fused"][0])
    slab = slab.at[H0_ROW:H0_ROW + 2, 0:HIDDEN].set(h0)
    slab = slab.at[C0_ROW:C0_ROW + 2, 0:HIDDEN].set(c0)
    slab = slab.at[WC_ROW:WC_ROW + 8, 0:HIDDEN].set(params["wc_blocks"])
    slab = slab.at[BC_ROW:BC_ROW + 2, 0].set(params["bc"][0])

    kernel = _make_kernel(L1, L2)
    vmem = pl.BlockSpec(memory_space=pltpu.MemorySpace.VMEM)
    out = pl.pallas_call(
        kernel,
        out_shape=jax.ShapeDtypeStruct((2, 1), jnp.float32),
        in_specs=[vmem, vmem, vmem],
        out_specs=vmem,
        scratch_shapes=[pltpu.VMEM((rows_pad, GP), jnp.float32)],
    )(embs, params["wih_fused"], slab)
    return out.reshape(1, 1, NOUT)


def _reference_forward(emb1, emb2, params, h0, c0):
    """Pure-JAX reference with the ORIGINAL (unfused, unfolded) math."""
    def run(emb, h, c):
        for t in range(emb.shape[0]):
            x = emb[t:t + 1]
            i = jax.nn.sigmoid(x @ params["wih_t"][0] + h @ params["whh_t"][0]
                               + params["b_gates"][0])
            f = jax.nn.sigmoid(x @ params["wih_t"][1] + h @ params["whh_t"][1]
                               + params["b_gates"][1])
            g = jnp.tanh(x @ params["wih_t"][2] + h @ params["whh_t"][2]
                         + params["b_gates"][2])
            o = jax.nn.sigmoid(x @ params["wih_t"][3] + h @ params["whh_t"][3]
                               + params["b_gates"][3])
            c = f * c + i * g
            h = o * jnp.tanh(c)
        return h

    v1 = run(emb1, h0[0:1], c0[0:1])
    v2 = run(emb2, h0[1:2], c0[1:2])
    vec = jnp.concatenate(
        [v1, jnp.abs(v1 - v2), v2, v1 * v2, (v1 + v2) * 0.5], axis=-1)
    hdn = vec @ params["w1"].T + params["b1"]
    return (hdn @ params["w2"].T + params["b2"]).reshape(1, 1, NOUT)


def _init_params(key):
    ks = jax.random.split(key, 8)
    s = 1.0 / (HIDDEN ** 0.5)
    # LSTM weights, PyTorch layout (4*H, E) / (4*H, H), gate order i, f, g, o.
    w_ih = jax.random.uniform(ks[0], (4, HIDDEN, EMBED), jnp.float32, -s, s)
    w_hh = jax.random.uniform(ks[1], (4, HIDDEN, HIDDEN), jnp.float32, -s, s)
    b_ih = jax.random.uniform(ks[2], (4, 1, HIDDEN), jnp.float32, -s, s)
    b_hh = jax.random.uniform(ks[3], (4, 1, HIDDEN), jnp.float32, -s, s)
    # classifier: Linear(125, 5), Linear(5, 2)
    s1 = 1.0 / ((5 * HIDDEN) ** 0.5)
    w1 = jax.random.uniform(ks[4], (INNER, 5 * HIDDEN), jnp.float32, -s1, s1)
    b1 = jax.random.uniform(ks[5], (1, INNER), jnp.float32, -s1, s1)
    s2 = 1.0 / (INNER ** 0.5)
    w2 = jax.random.uniform(ks[6], (NOUT, INNER), jnp.float32, -s2, s2)
    b2 = jax.random.uniform(ks[7], (1, NOUT), jnp.float32, -s2, s2)

    wih_t = jnp.transpose(w_ih, (0, 2, 1))     # (4, EMBED, HIDDEN)
    whh_t = jnp.transpose(w_hh, (0, 2, 1))     # (4, HIDDEN, HIDDEN)
    b_gates = b_ih + b_hh                      # (4, 1, HIDDEN)

    def fuse_pad(blocks, out_rows):
        """Fuse 4 gate blocks along lanes (i|f|g|o), pad each to HP lanes."""
        out = jnp.zeros((out_rows, GP), jnp.float32)
        nrows = blocks.shape[1]
        for g in range(4):
            out = out.at[:nrows, g * HP:g * HP + HIDDEN].set(blocks[g])
        return out

    wih_fused = fuse_pad(wih_t, EMBED)         # (300, 128)
    whh_fused = fuse_pad(whh_t, HP)            # (32, 128), rows 25:32 zero
    b_fused = fuse_pad(b_gates, 1)             # (1, 128)

    # fold Linear(125,5) ∘ Linear(5,2) -> single Linear(125,2) (exact, no act.)
    w_comb = w1.T @ w2.T                       # (125, 2)
    b_comb = b1 @ w2.T + b2                    # (1, 2)
    # regroup the (v1+v2)/2 block into the v1 / v2 blocks:
    #   out = v1@(A+E/2) + |v1-v2|@B + v2@(C+E/2) + (v1*v2)@D + b
    A, B, C, D, E = (w_comb[i * HIDDEN:(i + 1) * HIDDEN] for i in range(5))
    blocks = [A + 0.5 * E, B, C + 0.5 * E, D]  # order: v1, |v1-v2|, v2, v1*v2
    wc_blocks = jnp.concatenate([blk.T for blk in blocks], axis=0)  # (8, 25)

    return {
        # fused / folded params consumed by the kernel
        "wih_fused": wih_fused,
        "whh_fused": whh_fused,
        "b_fused": b_fused,
        "wc_blocks": wc_blocks,
        "bc": b_comb,
        # raw params for the pure-JAX reference
        "wih_t": wih_t, "whh_t": whh_t, "b_gates": b_gates,
        "w1": w1, "b1": b1, "w2": w2, "b2": b2,
    }


if __name__ == "__main__":
    key = jax.random.PRNGKey(0)
    k_emb, k_par, k_s1, k_s2, k_h, k_c = jax.random.split(key, 6)

    # synthetic embedding table (glue — the nn.Embedding lookup stays in JAX)
    embedding_table = jax.random.normal(k_emb, (VOCAB, EMBED), jnp.float32)
    params = _init_params(k_par)

    # small token sequences (the module loops token-by-token; batch=1)
    L1, L2 = 6, 9
    s1 = jax.random.randint(k_s1, (L1,), 0, VOCAB)
    s2 = jax.random.randint(k_s2, (L2,), 0, VOCAB)
    emb1 = embedding_table[s1]                           # (L1, EMBED)
    emb2 = embedding_table[s2]                           # (L2, EMBED)

    # initHidden(): random h0/c0 per sequence (deterministic here);
    # row 0 -> sequence 1, row 1 -> sequence 2.
    h0 = jax.random.normal(k_h, (2, HIDDEN), jnp.float32)
    c0 = jax.random.normal(k_c, (2, HIDDEN), jnp.float32)

    out = siamese_lstm_v2_forward(emb1, emb2, params, h0, c0)
    out = jax.block_until_ready(out)

    ref = _reference_forward(emb1, emb2, params, h0, c0)
    assert out.shape == (1, 1, NOUT)
    assert jnp.allclose(out, ref, rtol=1e-3, atol=1e-3), (out, ref)

    print("KERNEL_OK")
</pallas_src>

<mosaic_0001>
module attributes {stable_mosaic.version = 11 : i64} {
  func.func @kernel(%arg0: memref<24x300xf32, #tpu.memory_space<vmem>>, %arg1: memref<300x128xf32, #tpu.memory_space<vmem>>, %arg2: memref<56x128xf32, #tpu.memory_space<vmem>>, %arg3: memref<2x1xf32, #tpu.memory_space<vmem>>, %arg4: memref<24x128xf32, #tpu.memory_space<vmem>>) attributes {dimension_semantics = [], scalar_prefetch = 0 : i64, scratch_operands = 1 : i64, tpu.core_type = #tpu.core_type<tc>} {
    %c32 = arith.constant 32 : index
    %c0 = arith.constant 0 : index
    %0 = vector.load %arg2[%c32, %c0] : memref<56x128xf32, #tpu.memory_space<vmem>>, vector<1x128xf32>
    %c0_0 = arith.constant 0 : index
    %c0_1 = arith.constant 0 : index
    %1 = vector.load %arg0[%c0_0, %c0_1] : memref<24x300xf32, #tpu.memory_space<vmem>>, vector<24x300xf32>
    %c0_2 = arith.constant 0 : index
    %c0_3 = arith.constant 0 : index
    %2 = vector.load %arg1[%c0_2, %c0_3] : memref<300x128xf32, #tpu.memory_space<vmem>>, vector<300x128xf32>
    %cst = arith.constant dense<0.000000e+00> : vector<24x128xf32>
    %3 = tpu.matmul %1, %2, %cst {dimension_numbers = #tpu.dot_dimension_numbers<[1], [0], [0], [1], [0, 0, 1, 1], [], []>} : vector<24x300xf32>, vector<300x128xf32>, vector<24x128xf32> -> vector<24x128xf32>
    %4 = vector.broadcast %0 : vector<1x128xf32> to vector<24x128xf32>
    %5 = arith.addf %3, %4 : vector<24x128xf32>
    %c0_4 = arith.constant 0 : index
    %c0_5 = arith.constant 0 : index
    %6 = vector.load %arg4[%c0_4, %c0_5] : memref<24x128xf32, #tpu.memory_space<vmem>>, vector<24x128xf32>
    tpu.vector_store %arg4[%c0_4, %c0_5], %5 {strides = array<i32>} : memref<24x128xf32, #tpu.memory_space<vmem>>, vector<24x128xf32>,
    %c0_6 = arith.constant 0 : index
    %c0_7 = arith.constant 0 : index
    %7 = vector.load %arg2[%c0_6, %c0_7] : memref<56x128xf32, #tpu.memory_space<vmem>>, vector<32x128xf32>
    %8 = tpu.iota {dimensions = array<i32: 1>} : vector<1x128xi32>
    %c64_i32 = arith.constant 64 : i32
    %9 = vector.broadcast %c64_i32 : i32 to vector<1x128xi32>
    %10 = arith.cmpi sge, %8, %9 : vector<1x128xi32>
    %c96_i32 = arith.constant 96 : i32
    %11 = vector.broadcast %c96_i32 : i32 to vector<1x128xi32>
    %12 = arith.cmpi slt, %8, %11 : vector<1x128xi32>
    %13 = arith.andi %10, %12 : vector<1x128xi1>
    %c34 = arith.constant 34 : index
    %c0_8 = arith.constant 0 : index
    %14 = vector.load %arg2[%c34, %c0_8] : memref<56x128xf32, #tpu.memory_space<vmem>>, vector<2x32xf32>
    %c36 = arith.constant 36 : index
    %c0_9 = arith.constant 0 : index
    %15 = vector.load %arg2[%c36, %c0_9] : memref<56x128xf32, #tpu.memory_space<vmem>>, vector<2x32xf32>
    %c0_10 = arith.constant 0 : index
    %c0_11 = arith.constant 0 : index
    %16 = vector.load %arg4[%c0_10, %c0_11] : memref<24x128xf32, #tpu.memory_space<vmem>>, vector<2x128xf32>
    %cst_12 = arith.constant dense<0.000000e+00> : vector<2x128xf32>
    %17 = tpu.matmul %14, %7, %cst_12 {dimension_numbers = #tpu.dot_dimension_numbers<[1], [0], [0], [1], [0, 0, 1, 1], [], []>} : vector<2x32xf32>, vector<32x128xf32>, vector<2x128xf32> -> vector<2x128xf32>
    %18 = arith.addf %16, %17 : vector<2x128xf32>
    %19 = math.tanh %18 : vector<2x128xf32>
    %cst_13 = arith.constant 0.000000e+00 : f32
    %20 = vector.broadcast %cst_13 : f32 to vector<2x128xf32>
    %21 = arith.subf %20, %18 : vector<2x128xf32>
    %22 = math.exp %21 : vector<2x128xf32>
    %cst_14 = arith.constant 1.000000e+00 : f32
    %23 = vector.broadcast %cst_14 : f32 to vector<2x128xf32>
    %24 = arith.addf %23, %22 : vector<2x128xf32>
    %cst_15 = arith.constant 1.000000e+00 : f32
    %25 = vector.broadcast %cst_15 : f32 to vector<2x128xf32>
    %26 = arith.divf %25, %24 : vector<2x128xf32>
    %27 = vector.shape_cast %13 : vector<1x128xi1> to vector<1x128xi1>
    %28 = vector.broadcast %27 : vector<1x128xi1> to vector<2x128xi1>
    %29 = arith.select %28, %19, %26 : vector<2x128xi1>, vector<2x128xf32>
    %30 = vector.extract_strided_slice %29 {offsets = [0, 0], sizes = [2, 32], strides = [1, 1]} : vector<2x128xf32> to vector<2x32xf32>
    %31 = vector.extract_strided_slice %29 {offsets = [0, 32], sizes = [2, 32], strides = [1, 1]} : vector<2x128xf32> to vector<2x32xf32>
    %32 = vector.extract_strided_slice %29 {offsets = [0, 64], sizes = [2, 32], strides = [1, 1]} : vector<2x128xf32> to vector<2x32xf32>
    %33 = vector.extract_strided_slice %29 {offsets = [0, 96], sizes = [2, 32], strides = [1, 1]} : vector<2x128xf32> to vector<2x32xf32>
    %34 = arith.mulf %31, %15 : vector<2x32xf32>
    %35 = arith.mulf %30, %32 : vector<2x32xf32>
    %36 = arith.addf %34, %35 : vector<2x32xf32>
    %37 = math.tanh %36 : vector<2x32xf32>
    %38 = arith.mulf %33, %37 : vector<2x32xf32>
    %c2 = arith.constant 2 : index
    %c0_16 = arith.constant 0 : index
    %39 = vector.load %arg4[%c2, %c0_16] : memref<24x128xf32, #tpu.memory_space<vmem>>, vector<2x128xf32>
    %cst_17 = arith.constant dense<0.000000e+00> : vector<2x128xf32>
    %40 = tpu.matmul %38, %7, %cst_17 {dimension_numbers = #tpu.dot_dimension_numbers<[1], [0], [0], [1], [0, 0, 1, 1], [], []>} : vector<2x32xf32>, vector<32x128xf32>, vector<2x128xf32> -> vector<2x128xf32>
    %41 = arith.addf %39, %40 : vector<2x128xf32>
    %42 = math.tanh %41 : vector<2x128xf32>
    %cst_18 = arith.constant 0.000000e+00 : f32
    %43 = vector.broadcast %cst_18 : f32 to vector<2x128xf32>
    %44 = arith.subf %43, %41 : vector<2x128xf32>
    %45 = math.exp %44 : vector<2x128xf32>
    %cst_19 = arith.constant 1.000000e+00 : f32
    %46 = vector.broadcast %cst_19 : f32 to vector<2x128xf32>
    %47 = arith.addf %46, %45 : vector<2x128xf32>
    %cst_20 = arith.constant 1.000000e+00 : f32
    %48 = vector.broadcast %cst_20 : f32 to vector<2x128xf32>
    %49 = arith.divf %48, %47 : vector<2x128xf32>
    %50 = vector.shape_cast %13 : vector<1x128xi1> to vector<1x128xi1>
    %51 = vector.broadcast %50 : vector<1x128xi1> to vector<2x128xi1>
    %52 = arith.select %51, %42, %49 : vector<2x128xi1>, vector<2x128xf32>
    %53 = vector.extract_strided_slice %52 {offsets = [0, 0], sizes = [2, 32], strides = [1, 1]} : vector<2x128xf32> to vector<2x32xf32>
    %54 = vector.extract_strided_slice %52 {offsets = [0, 32], sizes = [2, 32], strides = [1, 1]} : vector<2x128xf32> to vector<2x32xf32>
    %55 = vector.extract_strided_slice %52 {offsets = [0, 64], sizes = [2, 32], strides = [1, 1]} : vector<2x128xf32> to vector<2x32xf32>
    %56 = vector.extract_strided_slice %52 {offsets = [0, 96], sizes = [2, 32], strides = [1, 1]} : vector<2x128xf32> to vector<2x32xf32>
    %57 = arith.mulf %54, %36 : vector<2x32xf32>
    %58 = arith.mulf %53, %55 : vector<2x32xf32>
    %59 = arith.addf %57, %58 : vector<2x32xf32>
    %60 = math.tanh %59 : vector<2x32xf32>
    %61 = arith.mulf %56, %60 : vector<2x32xf32>
    %c4 = arith.constant 4 : index
    %c0_21 = arith.constant 0 : index
    %62 = vector.load %arg4[%c4, %c0_21] : memref<24x128xf32, #tpu.memory_space<vmem>>, vector<2x128xf32>
    %cst_22 = arith.constant dense<0.000000e+00> : vector<2x128xf32>
    %63 = tpu.matmul %61, %7, %cst_22 {dimension_numbers = #tpu.dot_dimension_numbers<[1], [0], [0], [1], [0, 0, 1, 1], [], []>} : vector<2x32xf32>, vector<32x128xf32>, vector<2x128xf32> -> vector<2x128xf32>
    %64 = arith.addf %62, %63 : vector<2x128xf32>
    %65 = math.tanh %64 : vector<2x128xf32>
    %cst_23 = arith.constant 0.000000e+00 : f32
    %66 = vector.broadcast %cst_23 : f32 to vector<2x128xf32>
    %67 = arith.subf %66, %64 : vector<2x128xf32>
    %68 = math.exp %67 : vector<2x128xf32>
    %cst_24 = arith.constant 1.000000e+00 : f32
    %69 = vector.broadcast %cst_24 : f32 to vector<2x128xf32>
    %70 = arith.addf %69, %68 : vector<2x128xf32>
    %cst_25 = arith.constant 1.000000e+00 : f32
    %71 = vector.broadcast %cst_25 : f32 to vector<2x128xf32>
    %72 = arith.divf %71, %70 : vector<2x128xf32>
    %73 = vector.shape_cast %13 : vector<1x128xi1> to vector<1x128xi1>
    %74 = vector.broadcast %73 : vector<1x128xi1> to vector<2x128xi1>
    %75 = arith.select %74, %65, %72 : vector<2x128xi1>, vector<2x128xf32>
    %76 = vector.extract_strided_slice %75 {offsets = [0, 0], sizes = [2, 32], strides = [1, 1]} : vector<2x128xf32> to vector<2x32xf32>
    %77 = vector.extract_strided_slice %75 {offsets = [0, 32], sizes = [2, 32], strides = [1, 1]} : vector<2x128xf32> to vector<2x32xf32>
    %78 = vector.extract_strided_slice %75 {offsets = [0, 64], sizes = [2, 32], strides = [1, 1]} : vector<2x128xf32> to vector<2x32xf32>
    %79 = vector.extract_strided_slice %75 {offsets = [0, 96], sizes = [2, 32], strides = [1, 1]} : vector<2x128xf32> to vector<2x32xf32>
    %80 = arith.mulf %77, %59 : vector<2x32xf32>
    %81 = arith.mulf %76, %78 : vector<2x32xf32>
    %82 = arith.addf %80, %81 : vector<2x32xf32>
    %83 = math.tanh %82 : vector<2x32xf32>
    %84 = arith.mulf %79, %83 : vector<2x32xf32>
    %c6 = arith.constant 6 : index
    %c0_26 = arith.constant 0 : index
    %85 = vector.load %arg4[%c6, %c0_26] : memref<24x128xf32, #tpu.memory_space<vmem>>, vector<2x128xf32>
    %cst_27 = arith.constant dense<0.000000e+00> : vector<2x128xf32>
    %86 = tpu.matmul %84, %7, %cst_27 {dimension_numbers = #tpu.dot_dimension_numbers<[1], [0], [0], [1], [0, 0, 1, 1], [], []>} : vector<2x32xf32>, vector<32x128xf32>, vector<2x128xf32> -> vector<2x128xf32>
    %87 = arith.addf %85, %86 : vector<2x128xf32>
    %88 = math.tanh %87 : vector<2x128xf32>
    %cst_28 = arith.constant 0.000000e+00 : f32
    %89 = vector.broadcast %cst_28 : f32 to vector<2x128xf32>
    %90 = arith.subf %89, %87 : vector<2x128xf32>
    %91 = math.exp %90 : vector<2x128xf32>
    %cst_29 = arith.constant 1.000000e+00 : f32
    %92 = vector.broadcast %cst_29 : f32 to vector<2x128xf32>
    %93 = arith.addf %92, %91 : vector<2x128xf32>
    %cst_30 = arith.constant 1.000000e+00 : f32
    %94 = vector.broadcast %cst_30 : f32 to vector<2x128xf32>
    %95 = arith.divf %94, %93 : vector<2x128xf32>
    %96 = vector.shape_cast %13 : vector<1x128xi1> to vector<1x128xi1>
    %97 = vector.broadcast %96 : vector<1x128xi1> to vector<2x128xi1>
    %98 = arith.select %97, %88, %95 : vector<2x128xi1>, vector<2x128xf32>
    %99 = vector.extract_strided_slice %98 {offsets = [0, 0], sizes = [2, 32], strides = [1, 1]} : vector<2x128xf32> to vector<2x32xf32>
    %100 = vector.extract_strided_slice %98 {offsets = [0, 32], sizes = [2, 32], strides = [1, 1]} : vector<2x128xf32> to vector<2x32xf32>
    %101 = vector.extract_strided_slice %98 {offsets = [0, 64], sizes = [2, 32], strides = [1, 1]} : vector<2x128xf32> to vector<2x32xf32>
    %102 = vector.extract_strided_slice %98 {offsets = [0, 96], sizes = [2, 32], strides = [1, 1]} : vector<2x128xf32> to vector<2x32xf32>
    %103 = arith.mulf %100, %82 : vector<2x32xf32>
    %104 = arith.mulf %99, %101 : vector<2x32xf32>
    %105 = arith.addf %103, %104 : vector<2x32xf32>
    %106 = math.tanh %105 : vector<2x32xf32>
    %107 = arith.mulf %102, %106 : vector<2x32xf32>
    %c8 = arith.constant 8 : index
    %c0_31 = arith.constant 0 : index
    %108 = vector.load %arg4[%c8, %c0_31] : memref<24x128xf32, #tpu.memory_space<vmem>>, vector<2x128xf32>
    %cst_32 = arith.constant dense<0.000000e+00> : vector<2x128xf32>
    %109 = tpu.matmul %107, %7, %cst_32 {dimension_numbers = #tpu.dot_dimension_numbers<[1], [0], [0], [1], [0, 0, 1, 1], [], []>} : vector<2x32xf32>, vector<32x128xf32>, vector<2x128xf32> -> vector<2x128xf32>
    %110 = arith.addf %108, %109 : vector<2x128xf32>
    %111 = math.tanh %110 : vector<2x128xf32>
    %cst_33 = arith.constant 0.000000e+00 : f32
    %112 = vector.broadcast %cst_33 : f32 to vector<2x128xf32>
    %113 = arith.subf %112, %110 : vector<2x128xf32>
    %114 = math.exp %113 : vector<2x128xf32>
    %cst_34 = arith.constant 1.000000e+00 : f32
    %115 = vector.broadcast %cst_34 : f32 to vector<2x128xf32>
    %116 = arith.addf %115, %114 : vector<2x128xf32>
    %cst_35 = arith.constant 1.000000e+00 : f32
    %117 = vector.broadcast %cst_35 : f32 to vector<2x128xf32>
    %118 = arith.divf %117, %116 : vector<2x128xf32>
    %119 = vector.shape_cast %13 : vector<1x128xi1> to vector<1x128xi1>
    %120 = vector.broadcast %119 : vector<1x128xi1> to vector<2x128xi1>
    %121 = arith.select %120, %111, %118 : vector<2x128xi1>, vector<2x128xf32>
    %122 = vector.extract_strided_slice %121 {offsets = [0, 0], sizes = [2, 32], strides = [1, 1]} : vector<2x128xf32> to vector<2x32xf32>
    %123 = vector.extract_strided_slice %121 {offsets = [0, 32], sizes = [2, 32], strides = [1, 1]} : vector<2x128xf32> to vector<2x32xf32>
    %124 = vector.extract_strided_slice %121 {offsets = [0, 64], sizes = [2, 32], strides = [1, 1]} : vector<2x128xf32> to vector<2x32xf32>
    %125 = vector.extract_strided_slice %121 {offsets = [0, 96], sizes = [2, 32], strides = [1, 1]} : vector<2x128xf32> to vector<2x32xf32>
    %126 = arith.mulf %123, %105 : vector<2x32xf32>
    %127 = arith.mulf %122, %124 : vector<2x32xf32>
    %128 = arith.addf %126, %127 : vector<2x32xf32>
    %129 = math.tanh %128 : vector<2x32xf32>
    %130 = arith.mulf %125, %129 : vector<2x32xf32>
    %c10 = arith.constant 10 : index
    %c0_36 = arith.constant 0 : index
    %131 = vector.load %arg4[%c10, %c0_36] : memref<24x128xf32, #tpu.memory_space<vmem>>, vector<2x128xf32>
    %cst_37 = arith.constant dense<0.000000e+00> : vector<2x128xf32>
    %132 = tpu.matmul %130, %7, %cst_37 {dimension_numbers = #tpu.dot_dimension_numbers<[1], [0], [0], [1], [0, 0, 1, 1], [], []>} : vector<2x32xf32>, vector<32x128xf32>, vector<2x128xf32> -> vector<2x128xf32>
    %133 = arith.addf %131, %132 : vector<2x128xf32>
    %134 = math.tanh %133 : vector<2x128xf32>
    %cst_38 = arith.constant 0.000000e+00 : f32
    %135 = vector.broadcast %cst_38 : f32 to vector<2x128xf32>
    %136 = arith.subf %135, %133 : vector<2x128xf32>
    %137 = math.exp %136 : vector<2x128xf32>
    %cst_39 = arith.constant 1.000000e+00 : f32
    %138 = vector.broadcast %cst_39 : f32 to vector<2x128xf32>
    %139 = arith.addf %138, %137 : vector<2x128xf32>
    %cst_40 = arith.constant 1.000000e+00 : f32
    %140 = vector.broadcast %cst_40 : f32 to vector<2x128xf32>
    %141 = arith.divf %140, %139 : vector<2x128xf32>
    %142 = vector.shape_cast %13 : vector<1x128xi1> to vector<1x128xi1>
    %143 = vector.broadcast %142 : vector<1x128xi1> to vector<2x128xi1>
    %144 = arith.select %143, %134, %141 : vector<2x128xi1>, vector<2x128xf32>
    %145 = vector.extract_strided_slice %144 {offsets = [0, 0], sizes = [2, 32], strides = [1, 1]} : vector<2x128xf32> to vector<2x32xf32>
    %146 = vector.extract_strided_slice %144 {offsets = [0, 32], sizes = [2, 32], strides = [1, 1]} : vector<2x128xf32> to vector<2x32xf32>
    %147 = vector.extract_strided_slice %144 {offsets = [0, 64], sizes = [2, 32], strides = [1, 1]} : vector<2x128xf32> to vector<2x32xf32>
    %148 = vector.extract_strided_slice %144 {offsets = [0, 96], sizes = [2, 32], strides = [1, 1]} : vector<2x128xf32> to vector<2x32xf32>
    %149 = arith.mulf %146, %128 : vector<2x32xf32>
    %150 = arith.mulf %145, %147 : vector<2x32xf32>
    %151 = arith.addf %149, %150 : vector<2x32xf32>
    %152 = math.tanh %151 : vector<2x32xf32>
    %153 = arith.mulf %148, %152 : vector<2x32xf32>
    %154 = vector.extract_strided_slice %153 {offsets = [1, 0], sizes = [1, 32], strides = [1, 1]} : vector<2x32xf32> to vector<1x32xf32>
    %155 = vector.extract_strided_slice %151 {offsets = [1, 0], sizes = [1, 32], strides = [1, 1]} : vector<2x32xf32> to vector<1x32xf32>
    %c13 = arith.constant 13 : index
    %c0_41 = arith.constant 0 : index
    %156 = vector.load %arg4[%c13, %c0_41] : memref<24x128xf32, #tpu.memory_space<vmem>>, vector<1x128xf32>
    %cst_42 = arith.constant dense<0.000000e+00> : vector<1x128xf32>
    %157 = tpu.matmul %154, %7, %cst_42 {dimension_numbers = #tpu.dot_dimension_numbers<[1], [0], [0], [1], [0, 0, 1, 1], [], []>} : vector<1x32xf32>, vector<32x128xf32>, vector<1x128xf32> -> vector<1x128xf32>
    %158 = arith.addf %156, %157 : vector<1x128xf32>
    %159 = math.tanh %158 : vector<1x128xf32>
    %cst_43 = arith.constant 0.000000e+00 : f32
    %160 = vector.broadcast %cst_43 : f32 to vector<1x128xf32>
    %161 = arith.subf %160, %158 : vector<1x128xf32>
    %162 = math.exp %161 : vector<1x128xf32>
    %cst_44 = arith.constant 1.000000e+00 : f32
    %163 = vector.broadcast %cst_44 : f32 to vector<1x128xf32>
    %164 = arith.addf %163, %162 : vector<1x128xf32>
    %cst_45 = arith.constant 1.000000e+00 : f32
    %165 = vector.broadcast %cst_45 : f32 to vector<1x128xf32>
    %166 = arith.divf %165, %164 : vector<1x128xf32>
    %167 = arith.select %13, %159, %166 : vector<1x128xi1>, vector<1x128xf32>
    %168 = vector.extract_strided_slice %167 {offsets = [0, 0], sizes = [1, 32], strides = [1, 1]} : vector<1x128xf32> to vector<1x32xf32>
    %169 = vector.extract_strided_slice %167 {offsets = [0, 32], sizes = [1, 32], strides = [1, 1]} : vector<1x128xf32> to vector<1x32xf32>
    %170 = vector.extract_strided_slice %167 {offsets = [0, 64], sizes = [1, 32], strides = [1, 1]} : vector<1x128xf32> to vector<1x32xf32>
    %171 = vector.extract_strided_slice %167 {offsets = [0, 96], sizes = [1, 32], strides = [1, 1]} : vector<1x128xf32> to vector<1x32xf32>
    %172 = arith.mulf %169, %155 : vector<1x32xf32>
    %173 = arith.mulf %168, %170 : vector<1x32xf32>
    %174 = arith.addf %172, %173 : vector<1x32xf32>
    %175 = math.tanh %174 : vector<1x32xf32>
    %176 = arith.mulf %171, %175 : vector<1x32xf32>
    %c15 = arith.constant 15 : index
    %c0_46 = arith.constant 0 : index
    %177 = vector.load %arg4[%c15, %c0_46] : memref<24x128xf32, #tpu.memory_space<vmem>>, vector<1x128xf32>
    %cst_47 = arith.constant dense<0.000000e+00> : vector<1x128xf32>
    %178 = tpu.matmul %176, %7, %cst_47 {dimension_numbers = #tpu.dot_dimension_numbers<[1], [0], [0], [1], [0, 0, 1, 1], [], []>} : vector<1x32xf32>, vector<32x128xf32>, vector<1x128xf32> -> vector<1x128xf32>
    %179 = arith.addf %177, %178 : vector<1x128xf32>
    %180 = math.tanh %179 : vector<1x128xf32>
    %cst_48 = arith.constant 0.000000e+00 : f32
    %181 = vector.broadcast %cst_48 : f32 to vector<1x128xf32>
    %182 = arith.subf %181, %179 : vector<1x128xf32>
    %183 = math.exp %182 : vector<1x128xf32>
    %cst_49 = arith.constant 1.000000e+00 : f32
    %184 = vector.broadcast %cst_49 : f32 to vector<1x128xf32>
    %185 = arith.addf %184, %183 : vector<1x128xf32>
    %cst_50 = arith.constant 1.000000e+00 : f32
    %186 = vector.broadcast %cst_50 : f32 to vector<1x128xf32>
    %187 = arith.divf %186, %185 : vector<1x128xf32>
    %188 = arith.select %13, %180, %187 : vector<1x128xi1>, vector<1x128xf32>
    %189 = vector.extract_strided_slice %188 {offsets = [0, 0], sizes = [1, 32], strides = [1, 1]} : vector<1x128xf32> to vector<1x32xf32>
    %190 = vector.extract_strided_slice %188 {offsets = [0, 32], sizes = [1, 32], strides = [1, 1]} : vector<1x128xf32> to vector<1x32xf32>
    %191 = vector.extract_strided_slice %188 {offsets = [0, 64], sizes = [1, 32], strides = [1, 1]} : vector<1x128xf32> to vector<1x32xf32>
    %192 = vector.extract_strided_slice %188 {offsets = [0, 96], sizes = [1, 32], strides = [1, 1]} : vector<1x128xf32> to vector<1x32xf32>
    %193 = arith.mulf %190, %174 : vector<1x32xf32>
    %194 = arith.mulf %189, %191 : vector<1x32xf32>
    %195 = arith.addf %193, %194 : vector<1x32xf32>
    %196 = math.tanh %195 : vector<1x32xf32>
    %197 = arith.mulf %192, %196 : vector<1x32xf32>
    %c17 = arith.constant 17 : index
    %c0_51 = arith.constant 0 : index
    %198 = vector.load %arg4[%c17, %c0_51] : memref<24x128xf32, #tpu.memory_space<vmem>>, vector<1x128xf32>
    %cst_52 = arith.constant dense<0.000000e+00> : vector<1x128xf32>
    %199 = tpu.matmul %197, %7, %cst_52 {dimension_numbers = #tpu.dot_dimension_numbers<[1], [0], [0], [1], [0, 0, 1, 1], [], []>} : vector<1x32xf32>, vector<32x128xf32>, vector<1x128xf32> -> vector<1x128xf32>
    %200 = arith.addf %198, %199 : vector<1x128xf32>
    %201 = math.tanh %200 : vector<1x128xf32>
    %cst_53 = arith.constant 0.000000e+00 : f32
    %202 = vector.broadcast %cst_53 : f32 to vector<1x128xf32>
    %203 = arith.subf %202, %200 : vector<1x128xf32>
    %204 = math.exp %203 : vector<1x128xf32>
    %cst_54 = arith.constant 1.000000e+00 : f32
    %205 = vector.broadcast %cst_54 : f32 to vector<1x128xf32>
    %206 = arith.addf %205, %204 : vector<1x128xf32>
    %cst_55 = arith.constant 1.000000e+00 : f32
    %207 = vector.broadcast %cst_55 : f32 to vector<1x128xf32>
    %208 = arith.divf %207, %206 : vector<1x128xf32>
    %209 = arith.select %13, %201, %208 : vector<1x128xi1>, vector<1x128xf32>
    %210 = vector.extract_strided_slice %209 {offsets = [0, 0], sizes = [1, 32], strides = [1, 1]} : vector<1x128xf32> to vector<1x32xf32>
    %211 = vector.extract_strided_slice %209 {offsets = [0, 32], sizes = [1, 32], strides = [1, 1]} : vector<1x128xf32> to vector<1x32xf32>
    %212 = vector.extract_strided_slice %209 {offsets = [0, 64], sizes = [1, 32], strides = [1, 1]} : vector<1x128xf32> to vector<1x32xf32>
    %213 = vector.extract_strided_slice %209 {offsets = [0, 96], sizes = [1, 32], strides = [1, 1]} : vector<1x128xf32> to vector<1x32xf32>
    %214 = arith.mulf %211, %195 : vector<1x32xf32>
    %215 = arith.mulf %210, %212 : vector<1x32xf32>
    %216 = arith.addf %214, %215 : vector<1x32xf32>
    %217 = math.tanh %216 : vector<1x32xf32>
    %218 = arith.mulf %213, %217 : vector<1x32xf32>
    %219 = vector.extract_strided_slice %153 {offsets = [0, 0], sizes = [1, 32], strides = [1, 1]} : vector<2x32xf32> to vector<1x32xf32>
    %220 = arith.subf %219, %218 : vector<1x32xf32>
    %221 = math.absf %220 : vector<1x32xf32>
    %222 = arith.mulf %219, %218 : vector<1x32xf32>
    %c48 = arith.constant 48 : index
    %c0_56 = arith.constant 0 : index
    %223 = vector.load %arg2[%c48, %c0_56] : memref<56x128xf32, #tpu.memory_space<vmem>>, vector<2x1xf32>
    %c40 = arith.constant 40 : index
    %c0_57 = arith.constant 0 : index
    %224 = vector.load %arg2[%c40, %c0_57] : memref<56x128xf32, #tpu.memory_space<vmem>>, vector<2x32xf32>
    %225 = vector.broadcast %219 : vector<1x32xf32> to vector<2x32xf32>
    %226 = arith.mulf %224, %225 : vector<2x32xf32>
    %cst_58 = arith.constant dense<0.000000e+00> : vector<2xf32>
    %227 = vector.multi_reduction <add>, %226, %cst_58 [1] : vector<2x32xf32> to vector<2xf32>
    %228 = vector.shape_cast %227 : vector<2xf32> to vector<2x1xf32>
    %229 = arith.addf %223, %228 : vector<2x1xf32>
    %c42 = arith.constant 42 : index
    %c0_59 = arith.constant 0 : index
    %230 = vector.load %arg2[%c42, %c0_59] : memref<56x128xf32, #tpu.memory_space<vmem>>, vector<2x32xf32>
    %231 = vector.broadcast %221 : vector<1x32xf32> to vector<2x32xf32>
    %232 = arith.mulf %230, %231 : vector<2x32xf32>
    %cst_60 = arith.constant dense<0.000000e+00> : vector<2xf32>
    %233 = vector.multi_reduction <add>, %232, %cst_60 [1] : vector<2x32xf32> to vector<2xf32>
    %234 = vector.shape_cast %233 : vector<2xf32> to vector<2x1xf32>
    %235 = arith.addf %229, %234 : vector<2x1xf32>
    %c44 = arith.constant 44 : index
    %c0_61 = arith.constant 0 : index
    %236 = vector.load %arg2[%c44, %c0_61] : memref<56x128xf32, #tpu.memory_space<vmem>>, vector<2x32xf32>
    %237 = vector.broadcast %218 : vector<1x32xf32> to vector<2x32xf32>
    %238 = arith.mulf %236, %237 : vector<2x32xf32>
    %cst_62 = arith.constant dense<0.000000e+00> : vector<2xf32>
    %239 = vector.multi_reduction <add>, %238, %cst_62 [1] : vector<2x32xf32> to vector<2xf32>
    %240 = vector.shape_cast %239 : vector<2xf32> to vector<2x1xf32>
    %241 = arith.addf %235, %240 : vector<2x1xf32>
    %c46 = arith.constant 46 : index
    %c0_63 = arith.constant 0 : index
    %242 = vector.load %arg2[%c46, %c0_63] : memref<56x128xf32, #tpu.memory_space<vmem>>, vector<2x32xf32>
    %243 = vector.broadcast %222 : vector<1x32xf32> to vector<2x32xf32>
    %244 = arith.mulf %242, %243 : vector<2x32xf32>
    %cst_64 = arith.constant dense<0.000000e+00> : vector<2xf32>
    %245 = vector.multi_reduction <add>, %244, %cst_64 [1] : vector<2x32xf32> to vector<2xf32>
    %246 = vector.shape_cast %245 : vector<2xf32> to vector<2x1xf32>
    %247 = arith.addf %241, %246 : vector<2x1xf32>
    %c0_65 = arith.constant 0 : index
    %c0_66 = arith.constant 0 : index
    %248 = vector.load %arg3[%c0_65, %c0_66] : memref<2x1xf32, #tpu.memory_space<vmem>>, vector<2x1xf32>
    tpu.vector_store %arg3[%c0_65, %c0_66], %247 {strides = array<i32>} : memref<2x1xf32, #tpu.memory_space<vmem>>, vector<2x1xf32>,
    return
  }
}

</mosaic_0001>

<bundles_post_ra>
// kernel: tpu_custom_call.1
= control target key start
LH: loop header
LB: loop body
LE: loop exit
PB: predicated region body
PF: predicated region fallthrough
CT: control target
= control target key end

     0   :  { %8 = vsyncpa [#allocation4], 0  ;;  %s2002_s0 = inlined_call_operand.hbm [shape: f32[24,300], index: 0, kind: input, shape index: {}]   ;;  %s2003_s1 = inlined_call_operand.hbm [shape: f32[300,128], index: 1, kind: input, shape index: {}]   ;;  %s2004_s2 = inlined_call_operand.hbm [shape: f32[56,128], index: 2, kind: input, shape index: {}]   ;;  %s2005_s3 = inlined_call_operand.vmem [shape: f32[2,1], index: 3, kind: output, shape index: {}]  }
   0x1   :  { %9 = vsyncpa [#allocation6], 0  ;;  %s1771_s12 = smov [#allocation5]   ;;  %s1701_s16 = scalar_lea.hbm %s2003_s1, 4864 }
   0x2   :  { %s27_s13 = sshll.u32 %s1771_s12, 4  ;;  %p1702_p0 = scmp.ne.s32.totalorder %s2003_s1, %s1701_s16  ;;  %s28_s13 = int_to_ptr.vmem [resolvable:$true] %s27_s13 }
   0x3   :  { %p1705_p1 = scmp.lt.u32.totalorder %s1701_s16, %s2003_s1 }
   0x5   :  { %p1707_p2 = pnand %p1705_p1, %p1702_p0 }
   0x7   :  { %1710 = shalt.err (!%p1707_p2)
}
   0x8   :  { %s1711_s21 = scalar_lea.vmem %s28_s13, 4864  ;;  %p1716_p4 = scmp.lt.s32.totalorder %s28_s13, %s28_s13 }
   0x9   :  { %p1712_p3 = scmp.ne.s32.totalorder %s28_s13, %s1711_s21  ;;  %p1717_p5 = scmp.lt.s32.totalorder %s1711_s21, %s1711_s21 }
   0xb   :  { %p1718_p6 = por %p1717_p5, %p1716_p4 }
   0xd   :  { %p1719_p7 = pnand %p1718_p6, %p1712_p3 }
   0xf   :  { %1722 = shalt.err (!%p1719_p7)
}
  0x10   :  { %s1772_s22 = smov 128   ;;  %s1773_s23 = smov 8  }
  0x11   :  { %33 = dma.hbm_to_vmem [thread:$0]  %s2003_s1, 4864, %s28_s13, [#allocation6], %s1772_s22, %s1772_s22, %s1773_s23  }
  0x12   :  { %s1774_s26 = smov [#allocation3]   ;;  %s1723_s30 = scalar_lea.hbm %s2002_s0, 1152 }
  0x13   :  { %s15_s27 = sshll.u32 %s1774_s26, 4  ;;  %p1724_p8 = scmp.ne.s32.totalorder %s2002_s0, %s1723_s30  ;;  %s16_s27 = int_to_ptr.vmem [resolvable:$true] %s15_s27 }
  0x14   :  { %p1727_p9 = scmp.lt.u32.totalorder %s1723_s30, %s2002_s0 }
  0x16   :  { %p1729_p10 = pnand %p1727_p9, %p1724_p8 }
  0x18   :  { %1732 = shalt.err (!%p1729_p10)
}
  0x19   :  { %s1733_s8 = scalar_lea.vmem %s16_s27, 1152  ;;  %p1738_p12 = scmp.lt.s32.totalorder %s16_s27, %s16_s27 }
  0x1a   :  { %p1734_p11 = scmp.ne.s32.totalorder %s16_s27, %s1733_s8  ;;  %p1739_p13 = scmp.lt.s32.totalorder %s1733_s8, %s1733_s8 }
  0x1c   :  { %p1740_p0 = por %p1739_p13, %p1738_p12 }
  0x1e   :  { %p1741_p1 = pnand %p1740_p0, %p1734_p11 }
  0x20   :  { %1744 = shalt.err (!%p1741_p1)
}
  0x21   :  { %s1775_s1 = smov 384   ;;  %s1776_s9 = smov 24  }
  0x22   :  { %21 = dma.hbm_to_vmem [thread:$0]  %s2002_s0, 1152, %s16_s27, [#allocation4], %s1775_s1, %s1775_s1, %s1776_s9  }
  0x23   :  { %s1777_s12 = smov [#allocation7]   ;;  %s1745_s16 = scalar_lea.hbm %s2004_s2, 896 }
  0x24   :  { %s39_s13 = sshll.u32 %s1777_s12, 4  ;;  %p1746_p2 = scmp.ne.s32.totalorder %s2004_s2, %s1745_s16  ;;  %s40_s13 = int_to_ptr.vmem [resolvable:$true] %s39_s13 }
  0x25   :  { %p1749_p3 = scmp.lt.u32.totalorder %s1745_s16, %s2004_s2 }
  0x27   :  { %p1751_p4 = pnand %p1749_p3, %p1746_p2 }
  0x29   :  { %1754 = shalt.err (!%p1751_p4)
}
  0x2a   :  { %s1755_s21 = scalar_lea.vmem %s40_s13, 896  ;;  %p1760_p6 = scmp.lt.s32.totalorder %s40_s13, %s40_s13 }
  0x2b   :  { %p1756_p5 = scmp.ne.s32.totalorder %s40_s13, %s1755_s21  ;;  %p1761_p7 = scmp.lt.s32.totalorder %s1755_s21, %s1755_s21 }
  0x2d   :  { %p1762_p8 = por %p1761_p7, %p1760_p6 }
  0x2f   :  { %p1763_p9 = pnand %p1762_p8, %p1756_p5 }
  0x31   :  { %1766 = shalt.err (!%p1763_p9)
}
  0x32   :  { %45 = dma.hbm_to_vmem [thread:$0]  %s2004_s2, 896, %s40_s13, [#allocation6], %s1772_s22, %s1772_s22, %s1773_s23  }
  0x33   :  { %1767 = dma.done.wait [#allocation4], 1152  }
  0x34   :  { %1768 = vsyncadd [#allocation4], 4294966144 }
  0x35   :  { %1769 = dma.done.wait [#allocation6], 5760  }
  0x36   :  { %1770 = vsyncadd [#allocation6], 4294961536  ;;  %v1778_v0 = vmov 0.0|0.0   ;;  %vm1779_vm0 = vmmov 0   ;;  %v1780_v1 = vmov 0.0   ;;  %v81_v2 = vld [vmem:[#allocation5 + $0x80] sm:$0xff] }
  0x37   :  { %1552 = vmatprep.subr.bf16.mxu1 %v1778_v0  ;;  %1412 = vmatprep.mubr.msk.f32.mxu1 %vm1779_vm0, %v1780_v1  ;;  %v82_v3 = vld [vmem:[#allocation5 + $0x88] sm:$0xff]  ;;  %v65_v4 = vld [vmem:[#allocation5] sm:$0xff]  ;;  %v83_v7 = vld [vmem:[#allocation5 + $0x90] sm:$0xff]  ;;  %vm117_vm1 = vcmask 1043456   ;;  %vm1781_vm2 = vmmov 1   ;;  %vm107_vm4 = vcmask 359424  }
  0x38   :  { %v1520_v5 = vpack.c.bf16 %v82_v3, %v81_v2  ;;  %v66_v6 = vld [vmem:[#allocation5 + $0x8] sm:$0xff]  ;;  %v84_v8 = vld [vmem:[#allocation5 + $0x98] sm:$0xff]  ;;  %v67_v11 = vld [vmem:[#allocation5 + $0x10] sm:$0xff]  ;;  %vm296_vm5 = vcmask 261120   ;;  %s1782_s2 = smov 64   ;;  %s1783_s22 = smov 32  }
  0x39   :  { %v1522_v9 = vpack.c.bf16 %v66_v6, %v65_v4  ;;  %v1524_v10 = vpack.c.bf16 %v84_v8, %v83_v7  ;;  %v68_v12 = vld [vmem:[#allocation5 + $0x18] sm:$0xff]  ;;  %v85_v13 = vld [vmem:[#allocation5 + $0xa0] sm:$0xff]  ;;  %v86_v14 = vld [vmem:[#allocation5 + $0xa8] sm:$0xff]  ;;  %vm1236_vm9 = vcmask 254976   ;;  %vm1283_vm10 = vcmask 1024  }
  0x3a   :  { %1521 = vmatprep.subr.bf16.mxu0 %v1520_v5  ;;  %v1526_v15 = vpack.c.bf16 %v68_v12, %v67_v11  ;;  %v1528_v16 = vpack.c.bf16 %v86_v14, %v85_v13  ;;  %v69_v17 = vld [vmem:[#allocation5 + $0x20] sm:$0xff]  ;;  %v70_v18 = vld [vmem:[#allocation5 + $0x28] sm:$0xff]  ;;  %v87_v19 = vld [vmem:[#allocation5 + $0xb0] sm:$0xff] }
  0x3b   :  { %1523 = vmatpush3.bf16.msra.mxu0 %v1522_v9  ;;  %v88_v20 = vld [vmem:[#allocation5 + $0xb8] sm:$0xff]  ;;  %v1530_v21 = vpack.c.bf16 %v70_v18, %v69_v17  ;;  %v97_v22 = vld [vmem:[#allocation5 + $0x100] sm:$0xff]  ;;  %v98_v23 = vld [vmem:[#allocation5 + $0x108] sm:$0xff] }
  0x3c   :  { %1525 = vmatprep.subr.bf16.mxu0 %v1524_v10  ;;  %v1532_v24 = vpack.c.bf16 %v88_v20, %v87_v19  ;;  %v71_v25 = vld [vmem:[#allocation5 + $0x30] sm:$0xff]  ;;  %v72_v26 = vld [vmem:[#allocation5 + $0x38] sm:$0xff]  ;;  %v89_v27 = vld [vmem:[#allocation5 + $0xc0] sm:$0xff]  ;;  %v1553_v28 = vpack.c.bf16 %v98_v23, %v97_v22 }
  0x3d   :  { %v90_v29 = vld [vmem:[#allocation5 + $0xc8] sm:$0xff]  ;;  %v99_v30 = vld [vmem:[#allocation5 + $0x110] sm:$0xff]  ;;  %v100_v31 = vld [vmem:[#allocation5 + $0x118] sm:$0xff]  ;;  %v1534_v33 = vpack.c.bf16 %v72_v26, %v71_v25 }
  0x3e   :  { %1554 = vmatpush3.bf16.msra.mxu1 %v1553_v28  ;;  %v1556_v32 = vpack.c.bf16 %v100_v31, %v99_v30  ;;  %v57_v34 = vld [vmem:[#allocation3 + $0x8] sm:$0xff]  ;;  %v102_v36 = vld [vmem:[#allocation5 + $0x128] sm:$0xf]  ;;  %v1536_v37 = vpack.c.bf16 %v90_v29, %v89_v27  ;;  %v91_v40 = vld [vmem:[#allocation5 + $0xd0] sm:$0xff] }
  0x3f   :  { %1527 = vmatpush3.bf16.msra.mxu0 %v1526_v15  ;;  %1555 = vmatprep.subr.bf16.mxu1 %v1778_v0  ;;  %v101_v35 = vld [vmem:[#allocation5 + $0x120] sm:$0xff]  ;;  %v74_v39 = vld [vmem:[#allocation5 + $0x48] sm:$0xff]  ;;  %v92_v41 = vld [vmem:[#allocation5 + $0xd8] sm:$0xff] }
  0x40   :  { %1529 = vmatprep.subr.bf16.mxu0 %v1528_v16  ;;  %v73_v38 = vld [vmem:[#allocation5 + $0x40] sm:$0xff]  ;;  %185 = vmatprep.mubr.f32.mxu0 %v57_v34  ;;  %v1559_v42 = vpack.c.bf16 %v102_v36, %v101_v35  ;;  %vm1560_vm3 = vmpackc.low %vm117_vm1, %vm1781_vm2  ;;  %v284_v44 = vld [vmem:[#allocation7] sm:$0xff]  ;;  %v1540_v46 = vpack.c.bf16 %v92_v41, %v91_v40 }
  0x41   :  { %v1538_v43 = vpack.c.bf16 %v74_v39, %v73_v38  ;;  %v285_v45 = vld [vmem:[#allocation7 + $0x8] sm:$0xff]  ;;  %v75_v47 = vld [vmem:[#allocation5 + $0x50] sm:$0xff]  ;;  %v93_v49 = vld [vmem:[#allocation5 + $0xe0] sm:$0xff] }
  0x42   :  { %1557 = vmatpush3.bf16.msra.mxu1 %v1556_v32  ;;  %v76_v48 = vld [vmem:[#allocation5 + $0x58] sm:$0xff]  ;;  %v94_v50 = vld [vmem:[#allocation5 + $0xe8] sm:$0xff]  ;;  %v1851_v52 = vpack.c.bf16 %v285_v45, %v284_v44  ;;  %v286_v54 = vld [vmem:[#allocation7 + $0x10] sm:$0xff] }
  0x43   :  { %1531 = vmatpush3.bf16.msra.mxu0 %v1530_v21  ;;  %1558 = vmatprep.subr.bf16.mxu1 %v1778_v0  ;;  %v58_v51 = vld [vmem:[#allocation3 + $0x10] sm:$0xff]  ;;  %v1542_v53 = vpack.c.bf16 %v76_v48, %v75_v47  ;;  %v1544_v56 = vpack.c.bf16 %v94_v50, %v93_v49  ;;  %v77_v57 = vld [vmem:[#allocation5 + $0x60] sm:$0xff]  ;;  %v95_v59 = vld [vmem:[#allocation5 + $0xf0] sm:$0xff] }
  0x44   :  { %1533 = vmatprep.subr.bf16.mxu0 %v1532_v24  ;;  %v287_v55 = vld [vmem:[#allocation7 + $0x18] sm:$0xff]  ;;  %v96_v60 = vld [vmem:[#allocation5 + $0xf8] sm:$0xff]  ;;  %v61_v61 = vld [vmem:[#allocation3 + $0x28] sm:$0xff] }
  0x45   :  { %v78_v58 = vld [vmem:[#allocation5 + $0x68] sm:$0xff]  ;;  %v1858_v62 = vpack.c.bf16 %v287_v55, %v286_v54  ;;  %v1548_v2 = vpack.c.bf16 %v96_v60, %v95_v59  ;;  %v79_v3 = vld [vmem:[#allocation5 + $0x70] sm:$0xff]  ;;  %v80_v4 = vld [vmem:[#allocation5 + $0x78] sm:$0xff] }
  0x46   :  { %1561 = vmatpush3.bf16.msk.msra.mxu1 %vm1560_vm3, %v1559_v42  ;;  %v1546_v63 = vpack.c.bf16 %v78_v58, %v77_v57  ;;  %v64_v5 = vld [vmem:[#allocation3 + $0x40] sm:$0xff]  ;;  %v1550_v6 = vpack.c.bf16 %v80_v4, %v79_v3  ;;  %v293_v7 = vld [vmem:[#allocation7 + $0x22] sm:$0x3]  ;;  %v62_v12 = vld [vmem:[#allocation3 + $0x30] sm:$0xff]  ;;  %v288_v42 = vlaneseq }
  0x47   :  { %1535 = vmatpush3.bf16.msra.mxu0 %v1534_v33  ;;  %1562 = vmatprep.subr.bf16.mxu1 %v1778_v0  ;;  %v56_v8 = vld [vmem:[#allocation3] sm:$0xff]  ;;  %v59_v10 = vld [vmem:[#allocation3 + $0x18] sm:$0xff] }
  0x48   :  { %1537 = vmatprep.subr.bf16.mxu0 %v1536_v37  ;;  %v60_v9 = vld [vmem:[#allocation3 + $0x20] sm:$0xff]  ;;  %v63_v11 = vld [vmem:[#allocation3 + $0x38] sm:$0xff]  ;;  %v289_v44 = vand.u32 127, %v288_v42 }
  0x49   :  { %1413 = vmatmul.mubr.msk.f32.vlgmr.msra.gmra.mrb[0].mxu1 %vm107_vm4, %v58_v51  ;;  %v1291_v23 = vld [vmem:[#allocation7 + $0x20] ss:$0 sm:$0xff]  ;;  %v294_v49 = vld [vmem:[#allocation7 + $0x24] sm:$0x3] }
  0x4a   :  { %1564 = vmatpush3.bf16.msra.mxu1 %v1851_v52  ;;  %1415 = vmatprep.mubr.msk.f32.mxu1 %vm1779_vm0, %v1780_v1  ;;  %vm290_vm6 = vcmp.ge.s32.totalorder %v289_v44, 64  ;;  %vm291_vm7 = vcmp.lt.s32.totalorder %v289_v44, 96 }
  0x4b   :  { %1539 = vmatpush3.bf16.msra.mxu0 %v1538_v43  ;;  %1565 = vmatprep.subr.bf16.mxu1 %v1778_v0  ;;  %vm1884_vm8 = vmand %vm290_vm6, %vm291_vm7 }
  0x4c   :  { %1541 = vmatprep.subr.bf16.mxu0 %v1540_v46 }
  0x4d   :  { %1416 = vmatmul.mubr.msk.f32.gmra.mrb[2].mxu1 %vm107_vm4, %v61_v61 }
  0x4e   :  { %1418 = vmatprep.mubr.msk.f32.mxu1 %vm1779_vm0, %v1780_v1  ;;  %1567 = vmatpush3.bf16.msra.mxu1 %v1858_v62 }
  0x4f   :  { %1543 = vmatpush3.bf16.msra.mxu0 %v1542_v53  ;;  %1568 = vmatprep.subr.bf16.mxu1 %v1778_v0 }
  0x50   :  { %1545 = vmatprep.subr.bf16.mxu0 %v1544_v56 }
  0x51   :  { %1419 = vmatmul.mubr.msk.f32.gmra.mrb[4].mxu1 %vm107_vm4, %v64_v5 }
  0x52   :  { %1429 = vmatprep.mubr.msk.f32.mxu1 %vm1779_vm0, %v1780_v1 }
  0x53   :  { %1547 = vmatpush3.bf16.msra.mxu0 %v1546_v63 }
  0x54   :  { %1549 = vmatprep.subr.bf16.mxu0 %v1548_v2 }
  0x55   :  { %1430 = vmatmul.mubr.msk.f32.vlgmr.msra.gmra.mrb[6].mxu1 %vm296_vm5, %v293_v7 }
  0x56   :  { %1570 = vmatpush3.bf16.msra.mxu1 %v1851_v52  ;;  %1440 = vmatprep.mubr.msk.f32.mxu1 %vm1779_vm0, %v1780_v1 }
  0x57   :  { %1551 = vmatpush3.bf16.msra.mxu0 %v1550_v6  ;;  %1571 = vmatprep.subr.bf16.mxu1 %v1778_v0 }
  0x58   :  { %1580 = vmatprep.subr.bf16.mxu0 %v1778_v0 }
  0x5a   :  { %186 = vmatmul.mubr.f32.vlgmr.msra.gmra.mrb[0].mxu0 %v56_v8  ;;  %1573 = vmatpush3.bf16.msra.mxu1 %v1858_v62 }
  0x5b   :  { %190 = vmatprep.mubr.f32.mxu0 %v60_v9  ;;  %1582 = vmatpush3.bf16.msra.mxu0 %v1851_v52 }
  0x5c   :  { %1583 = vmatprep.subr.bf16.mxu0 %v1778_v0  ;;  %1574 = vmatprep.subr.bf16.mxu1 %v1778_v0 }
  0x5e   :  { %191 = vmatmul.mubr.f32.gmra.mrb[2].mxu0 %v59_v10 }
  0x5f   :  { %195 = vmatprep.mubr.f32.mxu0 %v63_v11  ;;  %1585 = vmatpush3.bf16.msra.mxu0 %v1858_v62 }
  0x60   :  { %1592 = vmatprep.subr.bf16.mxu0 %v1778_v0 }
  0x62   :  { %196 = vmatmul.mubr.f32.gmra.mrb[4].mxu0 %v62_v12 }
  0x63   :  { %1462 = vmatprep.mubr.msk.f32.mxu0 %vm1779_vm0, %v1780_v1 }
 0x11c   :  { %v267_v13 = vpop.f32.mrb[0].mxu1 }
 0x11d   :  { %v1414_v14 = vpop.f32.mrb[1].mxu1 }
 0x120   :  { %v272_v15 = vpop.f32.mrb[2].mxu1 }
 0x121   :  { %v1417_v16 = vpop.f32.mrb[3].mxu1 }
 0x124   :  { %v277_v17 = vpop.f32.mrb[4].mxu1 }
 0x125   :  { %v1420_v18 = vpop.f32.mrb[5].mxu1 }
 0x128   :  { %v366_v19 = vpop.f32.mrb[6].mxu1 }
 0x129   :  { %v1431_v21 = vpop.f32.mrb[7].mxu1 }
 0x12d   :  { %v1337_v20 = vpop.f32.mrb[0].mxu0 }
 0x12e   :  { %v1338_v22 = vpop.f32.mrb[1].mxu0 }
 0x12f   :  { %v1339_v24 = vadd.f32 %v1338_v22, %v1337_v20 }
 0x131   :  { %v188_v25 = vadd.f32 %v1339_v24, %v1291_v23  ;;  %v1340_v26 = vpop.f32.mrb[2].mxu0 }
 0x132   :  { %v1341_v27 = vpop.f32.mrb[3].mxu0 }
 0x133   :  { %v268_v28 = vadd.f32 %v267_v13, %v188_v25  ;;  %v1342_v29 = vadd.f32 %v1341_v27, %v1340_v26 }
 0x135   :  { %281 = vst [vmem:[#allocation2] sm:$0xff] %v268_v28  ;;  %v193_v30 = vadd.f32 %v1342_v29, %v1291_v23  ;;  %v1343_v31 = vpop.f32.mrb[4].mxu0 }
 0x136   :  { %v1344_v32 = vpop.f32.mrb[5].mxu0 }
 0x137   :  { %v273_v33 = vadd.f32 %v272_v15, %v193_v30  ;;  %v1345_v34 = vadd.f32 %v1344_v32, %v1343_v31 }
 0x139   :  { %282 = vst [vmem:[#allocation2 + $0x8] sm:$0xff] %v273_v33  ;;  %v198_v35 = vadd.f32 %v1345_v34, %v1291_v23 }
 0x13b   :  { %v278_v36 = vadd.f32 %v277_v17, %v198_v35 }
 0x13c   :  { %v295_v37 = vld [vmem:[#allocation2] sm:$0x3]  ;;  %v402_v61 = vld [vmem:[#allocation2 + $0x2] sm:$0x3]  ;;  %v504_v20 = vld [vmem:[#allocation2 + $0x4] sm:$0x3] }
 0x13d   :  { %283 = vst [vmem:[#allocation2 + $0x10] sm:$0xff] %v278_v36  ;;  %v370_v38 = vadd.f32 %v366_v19, %v295_v37 }
 0x13f   :  { %v372_v39 = vsub.f32 0.0, %v370_v38 }
 0x141   :  { %v373_v40 = vmul.f32 1.442695, %v372_v39 }
 0x143   :  { %1629 = vpow2.f32 %v373_v40  ;;  %v606_v40 = vld [vmem:[#allocation2 + $0x6] sm:$0x3] }
 0x144   :  { %1631 = vtanh.f32 %v370_v38 }
 0x14d   :  { %v1630_v41 = vpop.eup %1629 }
 0x14e   :  { %v375_v43 = vadd.f32 1.0, %v1630_v41  ;;  %v1632_v46 = vpop.eup %1631 }
 0x150   :  { %1633 = vrcp.f32 %v375_v43 }
 0x15a   :  { %v1634_v47 = vpop.eup %1633 }
 0x15b   :  { %v380_v48 = vsel %vm1884_vm8, %v1632_v46, %v1634_v47 }
 0x15c   :  { %387 = vrot.lane.b32.xlu0 %v380_v48, %s1782_s2 }
 0x160   :  { %382 = vrot.lane.b32.xlu0 %v294_v49, %s1783_s22 }
 0x1ce   :  { %v388_v50 = vpop.permute.xlu0 %387 }
 0x1cf   :  { %v390_v51 = vmul.f32 %v388_v50, %v380_v48 }
 0x1d1   :  { %392 = vrot.lane.b32.xlu1 %v390_v51, %s1783_s22 }
 0x1d2   :  { %v383_v53 = vpop.permute.xlu0 %382 }
 0x1d3   :  { %v385_v54 = vmul.f32 %v383_v53, %v380_v48 }
 0x243   :  { %v393_v55 = vpop.permute.xlu1 %392 }
 0x244   :  { %v395_v56 = vadd.f32 %v393_v55, %v385_v54 }
 0x246   :  { %1635 = vtanh.f32 %v395_v56 }
 0x250   :  { %v1636_v57 = vpop.eup %1635 }
 0x251   :  { %398 = vrot.lane.b32.xlu1 %v1636_v57, %s1782_s2 }
 0x2c3   :  { %v399_v58 = vpop.permute.xlu1 %398 }
 0x2c4   :  { %v401_v59 = vmul.f32 %v399_v58, %v380_v48 }
 0x2c6   :  { %404 = vrot.lane.b32.xlu0 %v401_v59, %s1783_s22 }
 0x338   :  { %v405_v60 = vpop.permute.xlu0 %404 }
 0x339   :  { %1441 = vmatmul.mubr.msk.f32.vlgmr.msra.gmra.mrb[8].mxu1 %vm296_vm5, %v405_v60 }
 0x33a   :  { %1576 = vmatpush3.bf16.msra.mxu1 %v1851_v52  ;;  %1451 = vmatprep.mubr.msk.f32.mxu1 %vm1779_vm0, %v1780_v1 }
 0x33b   :  { %1577 = vmatprep.subr.bf16.mxu1 %v1778_v0 }
 0x33e   :  { %1579 = vmatpush3.bf16.msra.mxu1 %v1858_v62 }
 0x33f   :  { %1586 = vmatprep.subr.bf16.mxu1 %v1778_v0 }
 0x40c   :  { %v474_v63 = vpop.f32.mrb[8].mxu1 }
 0x40d   :  { %v478_v2 = vadd.f32 %v474_v63, %v402_v61  ;;  %v1442_v3 = vpop.f32.mrb[9].mxu1 }
 0x40f   :  { %v480_v4 = vsub.f32 0.0, %v478_v2 }
 0x411   :  { %v481_v5 = vmul.f32 1.442695, %v480_v4 }
 0x413   :  { %1637 = vpow2.f32 %v481_v5 }
 0x414   :  { %1639 = vtanh.f32 %v478_v2  ;;  %v708_v2 = vld [vmem:[#allocation2 + $0x8] sm:$0x3] }
 0x41d   :  { %v1638_v6 = vpop.eup %1637 }
 0x41e   :  { %v483_v7 = vadd.f32 1.0, %v1638_v6  ;;  %v1640_v8 = vpop.eup %1639 }
 0x420   :  { %1641 = vrcp.f32 %v483_v7 }
 0x42a   :  { %v1642_v9 = vpop.eup %1641 }
 0x42b   :  { %v486_v10 = vsel %vm1884_vm8, %v1640_v8, %v1642_v9 }
 0x42c   :  { %489 = vrot.lane.b32.xlu1 %v486_v10, %s1782_s2  ;;  %v487_v13 = vmul.f32 %v486_v10, %v395_v56 }
 0x49e   :  { %v490_v11 = vpop.permute.xlu1 %489 }
 0x49f   :  { %v492_v12 = vmul.f32 %v490_v11, %v486_v10 }
 0x4a1   :  { %494 = vrot.lane.b32.xlu0 %v492_v12, %s1783_s22 }
 0x513   :  { %v495_v14 = vpop.permute.xlu0 %494 }
 0x514   :  { %v497_v15 = vadd.f32 %v495_v14, %v487_v13 }
 0x516   :  { %1643 = vtanh.f32 %v497_v15 }
 0x520   :  { %v1644_v16 = vpop.eup %1643 }
 0x521   :  { %500 = vrot.lane.b32.xlu1 %v1644_v16, %s1782_s2 }
 0x593   :  { %v501_v17 = vpop.permute.xlu1 %500 }
 0x594   :  { %v503_v18 = vmul.f32 %v501_v17, %v486_v10 }
 0x596   :  { %506 = vrot.lane.b32.xlu0 %v503_v18, %s1783_s22 }
 0x608   :  { %v507_v19 = vpop.permute.xlu0 %506 }
 0x609   :  { %1452 = vmatmul.mubr.msk.f32.vlgmr.msra.gmra.mrb[10].mxu1 %vm296_vm5, %v507_v19 }
 0x60a   :  { %1588 = vmatpush3.bf16.msra.mxu1 %v1851_v52  ;;  %1473 = vmatprep.mubr.msk.f32.mxu1 %vm1779_vm0, %v1780_v1 }
 0x60b   :  { %1589 = vmatprep.subr.bf16.mxu1 %v1778_v0 }
 0x60e   :  { %1591 = vmatpush3.bf16.msra.mxu1 %v1858_v62 }
 0x60f   :  { %1598 = vmatprep.subr.bf16.mxu1 %v1778_v0 }
 0x6dc   :  { %v576_v21 = vpop.f32.mrb[10].mxu1 }
 0x6dd   :  { %v580_v22 = vadd.f32 %v576_v21, %v504_v20  ;;  %v1453_v23 = vpop.f32.mrb[11].mxu1 }
 0x6df   :  { %v582_v24 = vsub.f32 0.0, %v580_v22 }
 0x6e1   :  { %v583_v25 = vmul.f32 1.442695, %v582_v24 }
 0x6e3   :  { %1645 = vpow2.f32 %v583_v25 }
 0x6e4   :  { %1647 = vtanh.f32 %v580_v22  ;;  %v810_v22 = vld [vmem:[#allocation2 + $0xa] sm:$0x3] }
 0x6ed   :  { %v1646_v26 = vpop.eup %1645 }
 0x6ee   :  { %v585_v27 = vadd.f32 1.0, %v1646_v26  ;;  %v1648_v28 = vpop.eup %1647 }
 0x6f0   :  { %1649 = vrcp.f32 %v585_v27 }
 0x6fa   :  { %v1650_v29 = vpop.eup %1649 }
 0x6fb   :  { %v588_v30 = vsel %vm1884_vm8, %v1648_v28, %v1650_v29 }
 0x6fc   :  { %591 = vrot.lane.b32.xlu1 %v588_v30, %s1782_s2  ;;  %v589_v33 = vmul.f32 %v588_v30, %v497_v15 }
 0x76e   :  { %v592_v31 = vpop.permute.xlu1 %591 }
 0x76f   :  { %v594_v32 = vmul.f32 %v592_v31, %v588_v30 }
 0x771   :  { %596 = vrot.lane.b32.xlu0 %v594_v32, %s1783_s22 }
 0x7e3   :  { %v597_v34 = vpop.permute.xlu0 %596 }
 0x7e4   :  { %v599_v35 = vadd.f32 %v597_v34, %v589_v33 }
 0x7e6   :  { %1651 = vtanh.f32 %v599_v35 }
 0x7f0   :  { %v1652_v36 = vpop.eup %1651 }
 0x7f1   :  { %602 = vrot.lane.b32.xlu1 %v1652_v36, %s1782_s2 }
 0x863   :  { %v603_v37 = vpop.permute.xlu1 %602 }
 0x864   :  { %v605_v38 = vmul.f32 %v603_v37, %v588_v30 }
 0x866   :  { %608 = vrot.lane.b32.xlu0 %v605_v38, %s1783_s22 }
 0x8d8   :  { %v609_v39 = vpop.permute.xlu0 %608 }
 0x8d9   :  { %1463 = vmatmul.mubr.msk.f32.vlgmr.msra.gmra.mrb[6].mxu0 %vm296_vm5, %v609_v39 }
 0x8da   :  { %1594 = vmatpush3.bf16.msra.mxu0 %v1851_v52  ;;  %1484 = vmatprep.mubr.msk.f32.mxu0 %vm1779_vm0, %v1780_v1 }
 0x8db   :  { %1595 = vmatprep.subr.bf16.mxu0 %v1778_v0 }
 0x8de   :  { %1597 = vmatpush3.bf16.msra.mxu0 %v1858_v62 }
 0x8df   :  { %1604 = vmatprep.subr.bf16.mxu0 %v1778_v0 }
 0x9ac   :  { %v678_v41 = vpop.f32.mrb[6].mxu0 }
 0x9ad   :  { %v682_v43 = vadd.f32 %v678_v41, %v606_v40  ;;  %v1464_v44 = vpop.f32.mrb[7].mxu0 }
 0x9ae   :  { %v912_v44 = vld [vmem:[#allocation2 + $0xd] sm:$0x1] }
 0x9af   :  { %v684_v46 = vsub.f32 0.0, %v682_v43 }
 0x9b1   :  { %v685_v47 = vmul.f32 1.442695, %v684_v46 }
 0x9b3   :  { %1653 = vpow2.f32 %v685_v47 }
 0x9b4   :  { %1655 = vtanh.f32 %v682_v43 }
 0x9bd   :  { %v1654_v48 = vpop.eup %1653 }
 0x9be   :  { %v687_v49 = vadd.f32 1.0, %v1654_v48  ;;  %v1656_v50 = vpop.eup %1655 }
 0x9c0   :  { %1657 = vrcp.f32 %v687_v49 }
 0x9ca   :  { %v1658_v51 = vpop.eup %1657 }
 0x9cb   :  { %v690_v53 = vsel %vm1884_vm8, %v1656_v50, %v1658_v51 }
 0x9cc   :  { %693 = vrot.lane.b32.xlu1 %v690_v53, %s1782_s2  ;;  %v691_v56 = vmul.f32 %v690_v53, %v599_v35 }
 0xa3e   :  { %v694_v54 = vpop.permute.xlu1 %693 }
 0xa3f   :  { %v696_v55 = vmul.f32 %v694_v54, %v690_v53 }
 0xa41   :  { %698 = vrot.lane.b32.xlu0 %v696_v55, %s1783_s22 }
 0xab3   :  { %v699_v57 = vpop.permute.xlu0 %698 }
 0xab4   :  { %v701_v58 = vadd.f32 %v699_v57, %v691_v56 }
 0xab6   :  { %1659 = vtanh.f32 %v701_v58 }
 0xac0   :  { %v1660_v59 = vpop.eup %1659 }
 0xac1   :  { %704 = vrot.lane.b32.xlu1 %v1660_v59, %s1782_s2 }
 0xb33   :  { %v705_v60 = vpop.permute.xlu1 %704 }
 0xb34   :  { %v707_v61 = vmul.f32 %v705_v60, %v690_v53 }
 0xb36   :  { %710 = vrot.lane.b32.xlu0 %v707_v61, %s1783_s22 }
 0xba8   :  { %v711_v63 = vpop.permute.xlu0 %710 }
 0xba9   :  { %1474 = vmatmul.mubr.msk.f32.vlgmr.msra.gmra.mrb[12].mxu1 %vm296_vm5, %v711_v63 }
 0xbaa   :  { %1600 = vmatpush3.bf16.msra.mxu1 %v1851_v52  ;;  %1495 = vmatprep.mubr.msk.f32.mxu1 %vm1779_vm0, %v1780_v1 }
 0xbab   :  { %1601 = vmatprep.subr.bf16.mxu1 %v1778_v0 }
 0xbae   :  { %1603 = vmatpush3.bf16.msra.mxu1 %v1858_v62 }
 0xbaf   :  { %1610 = vmatprep.subr.bf16.mxu1 %v1778_v0 }
 0xc7c   :  { %v780_v3 = vpop.f32.mrb[12].mxu1 }
 0xc7d   :  { %v784_v4 = vadd.f32 %v780_v3, %v708_v2  ;;  %v1475_v5 = vpop.f32.mrb[13].mxu1  ;;  %v1018_v2 = vld [vmem:[#allocation2 + $0xf] sm:$0x1] }
 0xc7f   :  { %v786_v6 = vsub.f32 0.0, %v784_v4 }
 0xc81   :  { %v787_v7 = vmul.f32 1.442695, %v786_v6 }
 0xc83   :  { %1661 = vpow2.f32 %v787_v7 }
 0xc84   :  { %1663 = vtanh.f32 %v784_v4 }
 0xc8d   :  { %v1662_v8 = vpop.eup %1661 }
 0xc8e   :  { %v789_v9 = vadd.f32 1.0, %v1662_v8  ;;  %v1664_v10 = vpop.eup %1663 }
 0xc90   :  { %1665 = vrcp.f32 %v789_v9 }
 0xc9a   :  { %v1666_v11 = vpop.eup %1665 }
 0xc9b   :  { %v792_v12 = vsel %vm1884_vm8, %v1664_v10, %v1666_v11 }
 0xc9c   :  { %795 = vrot.lane.b32.xlu1 %v792_v12, %s1782_s2  ;;  %v793_v15 = vmul.f32 %v792_v12, %v701_v58 }
 0xd0e   :  { %v796_v13 = vpop.permute.xlu1 %795 }
 0xd0f   :  { %v798_v14 = vmul.f32 %v796_v13, %v792_v12 }
 0xd11   :  { %800 = vrot.lane.b32.xlu0 %v798_v14, %s1783_s22 }
 0xd83   :  { %v801_v16 = vpop.permute.xlu0 %800 }
 0xd84   :  { %v803_v17 = vadd.f32 %v801_v16, %v793_v15 }
 0xd86   :  { %1667 = vtanh.f32 %v803_v17 }
 0xd90   :  { %v1668_v18 = vpop.eup %1667 }
 0xd91   :  { %806 = vrot.lane.b32.xlu1 %v1668_v18, %s1782_s2 }
 0xe03   :  { %v807_v19 = vpop.permute.xlu1 %806 }
 0xe04   :  { %v809_v20 = vmul.f32 %v807_v19, %v792_v12 }
 0xe06   :  { %812 = vrot.lane.b32.xlu0 %v809_v20, %s1783_s22 }
 0xe78   :  { %v813_v21 = vpop.permute.xlu0 %812 }
 0xe79   :  { %1485 = vmatmul.mubr.msk.f32.vlgmr.msra.gmra.mrb[8].mxu0 %vm296_vm5, %v813_v21 }
 0xe7a   :  { %1606 = vmatpush3.bf16.msra.mxu0 %v1851_v52  ;;  %1506 = vmatprep.mubr.msk.f32.mxu0 %vm1779_vm0, %v1780_v1 }
 0xe7b   :  { %1607 = vmatprep.subr.bf16.mxu0 %v1778_v0 }
 0xe7e   :  { %1609 = vmatpush3.bf16.msra.mxu0 %v1858_v62 }
 0xf4c   :  { %v882_v23 = vpop.f32.mrb[8].mxu0 }
 0xf4d   :  { %v886_v24 = vadd.f32 %v882_v23, %v810_v22  ;;  %v1486_v25 = vpop.f32.mrb[9].mxu0  ;;  %v1120_v22 = vld [vmem:[#allocation2 + $0x11] sm:$0x1] }
 0xf4f   :  { %v888_v26 = vsub.f32 0.0, %v886_v24 }
 0xf51   :  { %v889_v27 = vmul.f32 1.442695, %v888_v26 }
 0xf53   :  { %1669 = vpow2.f32 %v889_v27 }
 0xf54   :  { %1671 = vtanh.f32 %v886_v24 }
 0xf5d   :  { %v1670_v28 = vpop.eup %1669 }
 0xf5e   :  { %v891_v29 = vadd.f32 1.0, %v1670_v28  ;;  %v1672_v30 = vpop.eup %1671 }
 0xf60   :  { %1673 = vrcp.f32 %v891_v29 }
 0xf6a   :  { %v1674_v31 = vpop.eup %1673 }
 0xf6b   :  { %v894_v32 = vsel %vm1884_vm8, %v1672_v30, %v1674_v31 }
 0xf6c   :  { %897 = vrot.lane.b32.xlu1 %v894_v32, %s1782_s2  ;;  %v895_v35 = vmul.f32 %v894_v32, %v803_v17 }
 0xfde   :  { %v898_v33 = vpop.permute.xlu1 %897 }
 0xfdf   :  { %v900_v34 = vmul.f32 %v898_v33, %v894_v32  ;;  %v1228_v33 = vshrl.u32 %v288_v42, 7 }
 0xfe1   :  { %902 = vrot.lane.b32.xlu0 %v900_v34, %s1783_s22 }
0x1053   :  { %v903_v36 = vpop.permute.xlu0 %902 }
0x1054   :  { %v905_v37 = vadd.f32 %v903_v36, %v895_v35  ;;  %v1229_v36 = vsub.s32 0, %v1228_v33 }
0x1056   :  { %1675 = vtanh.f32 %v905_v37  ;;  %v999_v55 = vrot.slane %v905_v37, 1 }
0x1060   :  { %v1676_v38 = vpop.eup %1675 }
0x1061   :  { %908 = vrot.lane.b32.xlu1 %v1676_v38, %s1782_s2 }
0x10d3   :  { %v909_v39 = vpop.permute.xlu1 %908 }
0x10d4   :  { %v1958_v40 = vmul.f32 %v909_v39, %v894_v32 }
0x10d6   :  { %v914_v41 = vrot.slane %v1958_v40, 1  ;;  %v1230_v37 = vrot.slane %v1958_v40, %v1229_v36 }
0x10d8   :  { %915 = vrot.lane.b32.xlu0 %v914_v41, %s1783_s22 }
0x114a   :  { %v916_v43 = vpop.permute.xlu0 %915 }
0x114b   :  { %1496 = vmatmul.mubr.msk.f32.vlgmr.msra.gmra.mrb[14].mxu1 %vm296_vm5, %v916_v43 }
0x114c   :  { %1612 = vmatpush3.bf16.msra.mxu1 %v1851_v52  ;;  %1517 = vmatprep.mubr.msk.f32.mxu1 %vm1779_vm0, %v1780_v1 }
0x114d   :  { %1613 = vmatprep.subr.bf16.mxu1 %v1778_v0 }
0x1150   :  { %1615 = vmatpush3.bf16.msra.mxu1 %v1858_v62 }
0x121e   :  { %v985_v46 = vpop.f32.mrb[14].mxu1 }
0x121f   :  { %v989_v47 = vadd.f32 %v985_v46, %v912_v44  ;;  %v1497_v48 = vpop.f32.mrb[15].mxu1 }
0x1221   :  { %v991_v49 = vsub.f32 0.0, %v989_v47 }
0x1223   :  { %v992_v50 = vmul.f32 1.442695, %v991_v49 }
0x1225   :  { %1677 = vpow2.f32 %v992_v50 }
0x1226   :  { %1679 = vtanh.f32 %v989_v47 }
0x122f   :  { %v1678_v51 = vpop.eup %1677 }
0x1230   :  { %v994_v53 = vadd.f32 1.0, %v1678_v51  ;;  %v1680_v54 = vpop.eup %1679  ;;  %v1226_v51 = vld [vmem:[#allocation7 + $0x28] sm:$0x3] }
0x1232   :  { %1681 = vrcp.f32 %v994_v53 }
0x123c   :  { %v1682_v52 = vpop.eup %1681 }
0x123d   :  { %v997_v1 = vsel %vm1884_vm8, %v1680_v54, %v1682_v52 }
0x123e   :  { %1003 = vrot.lane.b32.xlu1 %v997_v1, %s1782_s2  ;;  %v1001_v56 = vmul.f32 %v999_v55, %v997_v1  ;;  %v1241_v55 = vld [vmem:[#allocation7 + $0x2a] sm:$0x3] }
0x12b0   :  { %v1004_v0 = vpop.permute.xlu1 %1003 }
0x12b1   :  { %v1006_v62 = vmul.f32 %v1004_v0, %v997_v1 }
0x12b3   :  { %1008 = vrot.lane.b32.xlu0 %v1006_v62, %s1783_s22 }
0x1325   :  { %v1009_v57 = vpop.permute.xlu0 %1008 }
0x1326   :  { %v1011_v58 = vadd.f32 %v1009_v57, %v1001_v56 }
0x1328   :  { %1683 = vtanh.f32 %v1011_v58 }
0x1332   :  { %v1684_v59 = vpop.eup %1683 }
0x1333   :  { %1014 = vrot.lane.b32.xlu1 %v1684_v59, %s1782_s2 }
0x13a5   :  { %v1015_v60 = vpop.permute.xlu1 %1014 }
0x13a6   :  { %v1017_v61 = vmul.f32 %v1015_v60, %v997_v1  ;;  %v1255_v1 = vld [vmem:[#allocation7 + $0x2c] sm:$0x3] }
0x13a8   :  { %1020 = vrot.lane.b32.xlu0 %v1017_v61, %s1783_s22 }
0x141a   :  { %v1021_v63 = vpop.permute.xlu0 %1020 }
0x141b   :  { %1507 = vmatmul.mubr.msk.f32.vlgmr.msra.gmra.mrb[10].mxu0 %vm296_vm5, %v1021_v63 }
0x14ee   :  { %v1090_v3 = vpop.f32.mrb[10].mxu0 }
0x14ef   :  { %v1094_v4 = vadd.f32 %v1090_v3, %v1018_v2  ;;  %v1508_v5 = vpop.f32.mrb[11].mxu0  ;;  %v1225_v2 = vld [vmem:[#allocation7 + $0x30] sm:$0x3] }
0x14f1   :  { %v1096_v6 = vsub.f32 0.0, %v1094_v4 }
0x14f3   :  { %v1097_v7 = vmul.f32 1.442695, %v1096_v6 }
0x14f5   :  { %1685 = vpow2.f32 %v1097_v7 }
0x14f6   :  { %1687 = vtanh.f32 %v1094_v4 }
0x14ff   :  { %v1686_v8 = vpop.eup %1685 }
0x1500   :  { %v1099_v9 = vadd.f32 1.0, %v1686_v8  ;;  %v1688_v10 = vpop.eup %1687 }
0x1502   :  { %1689 = vrcp.f32 %v1099_v9 }
0x150c   :  { %v1690_v11 = vpop.eup %1689 }
0x150d   :  { %v1102_v12 = vsel %vm1884_vm8, %v1688_v10, %v1690_v11 }
0x150e   :  { %1105 = vrot.lane.b32.xlu1 %v1102_v12, %s1782_s2  ;;  %v1103_v15 = vmul.f32 %v1102_v12, %v1011_v58  ;;  %v1269_v58 = vld [vmem:[#allocation7 + $0x2e] sm:$0x3] }
0x1580   :  { %v1106_v13 = vpop.permute.xlu1 %1105 }
0x1581   :  { %v1108_v14 = vmul.f32 %v1106_v13, %v1102_v12 }
0x1583   :  { %1110 = vrot.lane.b32.xlu0 %v1108_v14, %s1783_s22 }
0x15f5   :  { %v1111_v16 = vpop.permute.xlu0 %1110 }
0x15f6   :  { %v1113_v17 = vadd.f32 %v1111_v16, %v1103_v15 }
0x15f8   :  { %1691 = vtanh.f32 %v1113_v17 }
0x1602   :  { %v1692_v18 = vpop.eup %1691 }
0x1603   :  { %1116 = vrot.lane.b32.xlu1 %v1692_v18, %s1782_s2 }
0x1675   :  { %v1117_v19 = vpop.permute.xlu1 %1116 }
0x1676   :  { %v1119_v20 = vmul.f32 %v1117_v19, %v1102_v12 }
0x1678   :  { %1122 = vrot.lane.b32.xlu0 %v1119_v20, %s1783_s22 }
0x16ea   :  { %v1123_v21 = vpop.permute.xlu0 %1122 }
0x16eb   :  { %1518 = vmatmul.mubr.msk.f32.vlgmr.msra.gmra.mrb[16].mxu1 %vm296_vm5, %v1123_v21 }
0x17be   :  { %v1192_v23 = vpop.f32.mrb[16].mxu1 }
0x17bf   :  { %v1196_v24 = vadd.f32 %v1192_v23, %v1120_v22  ;;  %v1519_v25 = vpop.f32.mrb[17].mxu1 }
0x17c1   :  { %v1198_v26 = vsub.f32 0.0, %v1196_v24 }
0x17c3   :  { %v1199_v27 = vmul.f32 1.442695, %v1198_v26 }
0x17c5   :  { %1693 = vpow2.f32 %v1199_v27 }
0x17c6   :  { %1695 = vtanh.f32 %v1196_v24 }
0x17cf   :  { %v1694_v28 = vpop.eup %1693 }
0x17d0   :  { %v1201_v29 = vadd.f32 1.0, %v1694_v28  ;;  %v1696_v30 = vpop.eup %1695 }
0x17d2   :  { %1697 = vrcp.f32 %v1201_v29 }
0x17dc   :  { %v1698_v31 = vpop.eup %1697 }
0x17dd   :  { %v1204_v32 = vsel %vm1884_vm8, %v1696_v30, %v1698_v31 }
0x17de   :  { %1207 = vrot.lane.b32.xlu1 %v1204_v32, %s1782_s2  ;;  %v1205_v38 = vmul.f32 %v1204_v32, %v1113_v17 }
0x1850   :  { %v1208_v34 = vpop.permute.xlu1 %1207 }
0x1851   :  { %v1210_v35 = vmul.f32 %v1208_v34, %v1204_v32 }
0x1853   :  { %1212 = vrot.lane.b32.xlu0 %v1210_v35, %s1783_s22 }
0x1857   :  { %1232 = vrot.lane.b32.xlu0 %v1230_v37, %s1783_s22 }
0x18c5   :  { %v1213_v39 = vpop.permute.xlu0 %1212 }
0x18c6   :  { %v1215_v41 = vadd.f32 %v1213_v39, %v1205_v38 }
0x18c8   :  { %1699 = vtanh.f32 %v1215_v41 }
0x18c9   :  { %v1233_v53 = vpop.permute.xlu0 %1232 }
0x18ca   :  { %v1235_v54 = vmul.f32 %v1233_v53, %v1226_v51 }
0x18cc   :  { %v1237_v52 = vsel %vm1236_vm9, %v1235_v54, 0.0 }
0x18d2   :  { %v1700_v43 = vpop.eup %1699 }
0x18d3   :  { %1218 = vrot.lane.b32.xlu1 %v1700_v43, %s1782_s2 }
0x1945   :  { %v1219_v45 = vpop.permute.xlu1 %1218 }
0x1946   :  { %v1221_v44 = vmul.f32 %v1219_v45, %v1204_v32 }
0x1948   :  { %v1222_v42 = vsub.f32 %v1958_v40, %v1221_v44  ;;  %v1259_v46 = vrot.slane %v1221_v44, %v1229_v36  ;;  %v1224_v48 = vmul.f32 %v1221_v44, %v1958_v40 }
0x194a   :  { %v1223_v47 = vand.u32 2147483647, %v1222_v42  ;;  %1261 = vrot.lane.b32.xlu0 %v1259_v46, %s1783_s22  ;;  %v1273_v50 = vrot.slane %v1224_v48, %v1229_v36 }
0x194c   :  { %v1245_v49 = vrot.slane %v1223_v47, %v1229_v36 }
0x194e   :  { %1247 = vrot.lane.b32.xlu1 %v1245_v49, %s1783_s22 }
0x1952   :  { %1275 = vrot.lane.b32.xlu1 %v1273_v50, %s1783_s22 }
0x1969   :  { %1238 = vadd.xlane.f32.xlu0 %v1237_v52 }
0x19bc   :  { %v1262_v0 = vpop.permute.xlu0 %1261 }
0x19bd   :  { %v1264_v62 = vmul.f32 %v1262_v0, %v1255_v1 }
0x19bf   :  { %v1265_v56 = vsel %vm1236_vm9, %v1264_v62, 0.0 }
0x19c0   :  { %1266 = vadd.xlane.f32.xlu0 %v1265_v56  ;;  %v1248_v40 = vpop.permute.xlu1 %1247 }
0x19c1   :  { %v1250_v57 = vmul.f32 %v1248_v40, %v1241_v55 }
0x19c3   :  { %v1251_v59 = vsel %vm1236_vm9, %v1250_v57, 0.0 }
0x19c4   :  { %1252 = vadd.xlane.f32.xlu1 %v1251_v59  ;;  %v1276_v60 = vpop.permute.xlu1 %1275 }
0x19c5   :  { %v1278_v61 = vmul.f32 %v1276_v60, %v1269_v58 }
0x19c7   :  { %v1279_v63 = vsel %vm1236_vm9, %v1278_v61, 0.0 }
0x19c8   :  { %1280 = vadd.xlane.f32.xlu0 %v1279_v63 }
0x19f6   :  { %v1239_v3 = vpop.xlane.xlu0 %1238 }
0x19f7   :  { %v1240_v4 = vadd.f32 %v1239_v3, %v1225_v2 }
0x1a4d   :  { %v1267_v5 = vpop.xlane.xlu0 %1266 }
0x1a51   :  { %v1253_v6 = vpop.xlane.xlu1 %1252 }
0x1a52   :  { %v1254_v7 = vadd.f32 %v1253_v6, %v1240_v4 }
0x1a54   :  { %v1268_v8 = vadd.f32 %v1267_v5, %v1254_v7 }
0x1a55   :  { %v1281_v9 = vpop.xlane.xlu0 %1280 }
0x1a56   :  { %v1282_v10 = vadd.f32 %v1281_v9, %v1268_v8 }
0x1a58   :  { %1284 = vst.msk [vmem:[%s2005_s3] sm:$0x3] %vm1283_vm10, %v1282_v10 }
0x1a59   :  { %1289 = vsyncpa [#allocation4], 1 }
0x1a5a   :  { %1290 = vsyncpa [#allocation6], 1 }

</bundles_post_ra>
